<compile_context>
chip_gen: v7x
topology: tpu7x:2x2x1
jax: 0.10.0
libtpu: 0.0.40
codegen_flags: <defaults>
</compile_context>

<pallas_src>
import jax
import jax.numpy as jnp
import numpy as np
from jax.experimental import pallas as pl
from jax.experimental.pallas import tpu as pltpu


def _round_up(v, m):
    return ((v + m - 1) // m) * m


def commblock_kernel(x_ref, adj_ref, w1_ref, b1_ref, w2_ref, b2_ref, o_ref):
    # Per-graph blocks (batch dim squeezed out by the BlockSpecs):
    #   x_ref:   [N_pad, H_pad] bf16        adj_ref: [N_pad, N_pad] bf16
    #   w*_ref:  [H_pad, H_pad] bf16        b*_ref:  [1, H_pad] f32
    #   o_ref:   [N_pad, H_pad] f32
    x = x_ref[...]
    adj = adj_ref[...]

    # ---- GCN layer 1: relu( adj @ (x @ W1 + b1) ) ----
    h = jnp.dot(x, w1_ref[...], preferred_element_type=jnp.float32)
    h = h + b1_ref[...]                                    # f32 bias add
    h = jnp.dot(adj, h.astype(jnp.bfloat16),
                preferred_element_type=jnp.float32)
    h = jnp.maximum(h, 0.0)                                # f32 ReLU

    # ---- Dropout ----
    # TODO(synk): train-mode dropout (Bernoulli mask + 1/(1-p) scaling via
    # pltpu.prng_seed / pltpu.prng_random_bits) not emitted; eval-mode dropout
    # is the identity.

    # ---- GCN layer 2: adj @ (h @ W2 + b2) ----
    h2 = jnp.dot(h.astype(jnp.bfloat16), w2_ref[...],
                 preferred_element_type=jnp.float32)
    h2 = h2 + b2_ref[...]
    o_ref[...] = jnp.dot(adj, h2.astype(jnp.bfloat16),
                         preferred_element_type=jnp.float32)


def comm_block(x, adj, w1, b1, w2, b2):
    """CommBlock forward.

    x:   [B, N, H] (or [N, H]) float32
    adj: [B, N, N] (or [N, N]) float32 dense (row-normalized) adjacency
    w1, w2: [H, H] float32;  b1, b2: [H] float32
    Returns a float32 array matching x's leading shape, last dim H.
    """
    squeeze = x.ndim == 2
    if squeeze:
        x, adj = x[None], adj[None]

    B, N, H = x.shape
    H_pad = _round_up(H, 128)   # lane-dense last dim (multiple of 128)
    N_pad = _round_up(N, 16)    # sublane-aligned for bf16 operands

    # Zero-pad operands.  Padded rows/cols of adj are zero, so padded rows/cols of
    # the output stay zero and the [:N, :H] slice reproduces the unpadded result.
    xp = jnp.zeros((B, N_pad, H_pad), jnp.bfloat16)
    xp = xp.at[:, :N, :H].set(x.astype(jnp.bfloat16))
    adjp = jnp.zeros((B, N_pad, N_pad), jnp.bfloat16)
    adjp = adjp.at[:, :N, :N].set(adj.astype(jnp.bfloat16))
    w1p = jnp.zeros((H_pad, H_pad), jnp.bfloat16).at[:H, :H].set(w1.astype(jnp.bfloat16))
    w2p = jnp.zeros((H_pad, H_pad), jnp.bfloat16).at[:H, :H].set(w2.astype(jnp.bfloat16))
    b1p = jnp.zeros((1, H_pad), jnp.float32).at[0, :H].set(b1.astype(jnp.float32))
    b2p = jnp.zeros((1, H_pad), jnp.float32).at[0, :H].set(b2.astype(jnp.float32))

    out = pl.pallas_call(
        commblock_kernel,
        out_shape=jax.ShapeDtypeStruct((B, N_pad, H_pad), jnp.float32),
        grid=(B,),
        in_specs=[
            pl.BlockSpec((None, N_pad, H_pad), lambda b: (b, 0, 0)),   # x   (per graph)
            pl.BlockSpec((None, N_pad, N_pad), lambda b: (b, 0, 0)),   # adj (per graph)
            pl.BlockSpec((H_pad, H_pad), lambda b: (0, 0)),            # W1  (grid-invariant)
            pl.BlockSpec((1, H_pad), lambda b: (0, 0)),                # b1  (grid-invariant)
            pl.BlockSpec((H_pad, H_pad), lambda b: (0, 0)),            # W2  (grid-invariant)
            pl.BlockSpec((1, H_pad), lambda b: (0, 0)),                # b2  (grid-invariant)
        ],
        out_specs=pl.BlockSpec((None, N_pad, H_pad), lambda b: (b, 0, 0)),
        compiler_params=pltpu.CompilerParams(
            dimension_semantics=("parallel",),   # shard graphs across TCs (v7x megacore)
        ),
    )(xp, adjp, w1p, b1p, w2p, b2p)

    out = out[:, :N, :H]
    return out[0] if squeeze else out


def reference_forward(x, adj, w1, b1, w2, b2):
    """Pure-JAX reference with the same bf16-operand / f32-accumulate recipe."""
    xb, ab = x.astype(jnp.bfloat16), adj.astype(jnp.bfloat16)
    w1b, w2b = w1.astype(jnp.bfloat16), w2.astype(jnp.bfloat16)
    h = jnp.einsum("bnh,hk->bnk", xb, w1b, preferred_element_type=jnp.float32) + b1
    h = jnp.einsum("bnm,bmk->bnk", ab, h.astype(jnp.bfloat16),
                   preferred_element_type=jnp.float32)
    h = jnp.maximum(h, 0.0)
    h2 = jnp.einsum("bnh,hk->bnk", h.astype(jnp.bfloat16), w2b,
                    preferred_element_type=jnp.float32) + b2
    return jnp.einsum("bnm,bmk->bnk", ab, h2.astype(jnp.bfloat16),
                      preferred_element_type=jnp.float32)


def xavier_uniform(key, shape):
    fan_in, fan_out = shape
    limit = float(np.sqrt(6.0 / (fan_in + fan_out)))
    return jax.random.uniform(key, shape, jnp.float32, -limit, limit)


if __name__ == "__main__":
    hidden_dim = 32   # config['hidden_dim'] stand-in
    N = 8             # graph nodes per graph
    B = 4             # batch of graphs (amortizes per-call overhead)

    key = jax.random.PRNGKey(0)
    k_x, k_adj, k_w1, k_w2 = jax.random.split(key, 4)

    # Inputs
    x = jax.random.normal(k_x, (B, N, hidden_dim), jnp.float32)

    def make_adj(k):
        a = (jax.random.uniform(k, (N, N)) > 0.5).astype(jnp.float32)
        a = jnp.maximum(a, a.T) + jnp.eye(N, dtype=jnp.float32)
        return a / jnp.sum(a, axis=1, keepdims=True)   # row-normalized + self loops

    adj = jax.vmap(make_adj)(jax.random.split(k_adj, B))

    # Parameters (xavier_uniform weights, zero biases) -- deterministic init.
    w1 = xavier_uniform(k_w1, (hidden_dim, hidden_dim))
    b1 = jnp.zeros((hidden_dim,), jnp.float32)
    w2 = xavier_uniform(k_w2, (hidden_dim, hidden_dim))
    b2 = jnp.zeros((hidden_dim,), jnp.float32)

    out = comm_block(x, adj, w1, b1, w2, b2)
    out = jax.block_until_ready(out)

    ref = reference_forward(x, adj, w1, b1, w2, b2)
    np.testing.assert_allclose(np.asarray(out), np.asarray(ref), rtol=2e-2, atol=2e-2)

    print("KERNEL_OK")
</pallas_src>

<mosaic_0001>
module attributes {stable_mosaic.version = 11 : i64} {
  func.func @commblock_kernel(%arg0: i32, %arg1: memref<1x16x128xbf16, #tpu.memory_space<vmem>>, %arg2: memref<1x16x16xbf16, #tpu.memory_space<vmem>>, %arg3: memref<128x128xbf16, #tpu.memory_space<vmem>>, %arg4: memref<1x128xf32, #tpu.memory_space<vmem>>, %arg5: memref<128x128xbf16, #tpu.memory_space<vmem>>, %arg6: memref<1x128xf32, #tpu.memory_space<vmem>>, %arg7: memref<1x16x128xf32, #tpu.memory_space<vmem>>) attributes {dimension_semantics = [#tpu.dimension_semantics<parallel>], iteration_bounds = array<i64: 4>, scalar_prefetch = 0 : i64, scratch_operands = 0 : i64, tpu.core_type = #tpu.core_type<tc>, window_params = [{transform_indices = @transform_0, window_bounds = array<i64: 1, 16, 128>}, {transform_indices = @transform_1, window_bounds = array<i64: 1, 16, 16>}, {pipeline_mode = #tpu.pipeline_mode<synchronous>, transform_indices = @transform_2, window_bounds = array<i64: 128, 128>}, {pipeline_mode = #tpu.pipeline_mode<synchronous>, transform_indices = @transform_3, window_bounds = array<i64: 1, 128>}, {pipeline_mode = #tpu.pipeline_mode<synchronous>, transform_indices = @transform_4, window_bounds = array<i64: 128, 128>}, {pipeline_mode = #tpu.pipeline_mode<synchronous>, transform_indices = @transform_5, window_bounds = array<i64: 1, 128>}, {transform_indices = @transform_6, window_bounds = array<i64: 1, 16, 128>}]} {
    %c0 = arith.constant 0 : index
    %c0_0 = arith.constant 0 : index
    %c0_1 = arith.constant 0 : index
    %0 = vector.load %arg1[%c0, %c0_0, %c0_1] : memref<1x16x128xbf16, #tpu.memory_space<vmem>>, vector<1x16x128xbf16>
    %1 = vector.shape_cast %0 : vector<1x16x128xbf16> to vector<16x128xbf16>
    %c0_2 = arith.constant 0 : index
    %c0_3 = arith.constant 0 : index
    %c0_4 = arith.constant 0 : index
    %2 = vector.load %arg2[%c0_2, %c0_3, %c0_4] : memref<1x16x16xbf16, #tpu.memory_space<vmem>>, vector<1x16x16xbf16>
    %3 = vector.shape_cast %2 : vector<1x16x16xbf16> to vector<16x16xbf16>
    %c0_5 = arith.constant 0 : index
    %c0_6 = arith.constant 0 : index
    %4 = vector.load %arg3[%c0_5, %c0_6] : memref<128x128xbf16, #tpu.memory_space<vmem>>, vector<128x128xbf16>
    %cst = arith.constant dense<0.000000e+00> : vector<16x128xf32>
    %5 = tpu.matmul %1, %4, %cst {dimension_numbers = #tpu.dot_dimension_numbers<[1], [0], [0], [1], [0, 0, 1, 1], [], []>} : vector<16x128xbf16>, vector<128x128xbf16>, vector<16x128xf32> -> vector<16x128xf32>
    %c0_7 = arith.constant 0 : index
    %c0_8 = arith.constant 0 : index
    %6 = vector.load %arg4[%c0_7, %c0_8] : memref<1x128xf32, #tpu.memory_space<vmem>>, vector<1x128xf32>
    %7 = vector.broadcast %6 : vector<1x128xf32> to vector<16x128xf32>
    %8 = arith.addf %5, %7 : vector<16x128xf32>
    %9 = arith.truncf %8 : vector<16x128xf32> to vector<16x128xbf16>
    %cst_9 = arith.constant dense<0.000000e+00> : vector<16x128xf32>
    %10 = tpu.matmul %3, %9, %cst_9 {dimension_numbers = #tpu.dot_dimension_numbers<[1], [0], [0], [1], [0, 0, 1, 1], [], []>} : vector<16x16xbf16>, vector<16x128xbf16>, vector<16x128xf32> -> vector<16x128xf32>
    %cst_10 = arith.constant 0.000000e+00 : f32
    %11 = vector.broadcast %cst_10 : f32 to vector<16x128xf32>
    %12 = arith.maximumf %10, %11 : vector<16x128xf32>
    %13 = arith.truncf %12 : vector<16x128xf32> to vector<16x128xbf16>
    %c0_11 = arith.constant 0 : index
    %c0_12 = arith.constant 0 : index
    %14 = vector.load %arg5[%c0_11, %c0_12] : memref<128x128xbf16, #tpu.memory_space<vmem>>, vector<128x128xbf16>
    %cst_13 = arith.constant dense<0.000000e+00> : vector<16x128xf32>
    %15 = tpu.matmul %13, %14, %cst_13 {dimension_numbers = #tpu.dot_dimension_numbers<[1], [0], [0], [1], [0, 0, 1, 1], [], []>} : vector<16x128xbf16>, vector<128x128xbf16>, vector<16x128xf32> -> vector<16x128xf32>
    %c0_14 = arith.constant 0 : index
    %c0_15 = arith.constant 0 : index
    %16 = vector.load %arg6[%c0_14, %c0_15] : memref<1x128xf32, #tpu.memory_space<vmem>>, vector<1x128xf32>
    %17 = vector.broadcast %16 : vector<1x128xf32> to vector<16x128xf32>
    %18 = arith.addf %15, %17 : vector<16x128xf32>
    %19 = arith.truncf %18 : vector<16x128xf32> to vector<16x128xbf16>
    %cst_16 = arith.constant dense<0.000000e+00> : vector<16x128xf32>
    %20 = tpu.matmul %3, %19, %cst_16 {dimension_numbers = #tpu.dot_dimension_numbers<[1], [0], [0], [1], [0, 0, 1, 1], [], []>} : vector<16x16xbf16>, vector<16x128xbf16>, vector<16x128xf32> -> vector<16x128xf32>
    %c0_17 = arith.constant 0 : index
    %c0_18 = arith.constant 0 : index
    %c0_19 = arith.constant 0 : index
    %21 = vector.load %arg7[%c0_17, %c0_18, %c0_19] : memref<1x16x128xf32, #tpu.memory_space<vmem>>, vector<1x16x128xf32>
    %22 = vector.shape_cast %21 : vector<1x16x128xf32> to vector<16x128xf32>
    %23 = vector.shape_cast %20 : vector<16x128xf32> to vector<1x16x128xf32>
    tpu.vector_store %arg7[%c0_17, %c0_18, %c0_19], %23 {strides = array<i32>} : memref<1x16x128xf32, #tpu.memory_space<vmem>>, vector<1x16x128xf32>,
    return
  }
  func.func @transform_0(%arg0: i32) -> (i32, i32, i32) {
    %c0_i32 = arith.constant 0 : i32
    %c0_i32_0 = arith.constant 0 : i32
    %c0_i32_1 = arith.constant 0 : i32
    return %arg0, %c0_i32, %c0_i32_0 : i32, i32, i32
  }
  func.func @transform_1(%arg0: i32) -> (i32, i32, i32) {
    %c0_i32 = arith.constant 0 : i32
    %c0_i32_0 = arith.constant 0 : i32
    %c0_i32_1 = arith.constant 0 : i32
    return %arg0, %c0_i32, %c0_i32_0 : i32, i32, i32
  }
  func.func @transform_2(%arg0: i32) -> (i32, i32) {
    %c0_i32 = arith.constant 0 : i32
    %c0_i32_0 = arith.constant 0 : i32
    %c0_i32_1 = arith.constant 0 : i32
    return %c0_i32, %c0_i32_0 : i32, i32
  }
  func.func @transform_3(%arg0: i32) -> (i32, i32) {
    %c0_i32 = arith.constant 0 : i32
    %c0_i32_0 = arith.constant 0 : i32
    %c0_i32_1 = arith.constant 0 : i32
    return %c0_i32, %c0_i32_0 : i32, i32
  }
  func.func @transform_4(%arg0: i32) -> (i32, i32) {
    %c0_i32 = arith.constant 0 : i32
    %c0_i32_0 = arith.constant 0 : i32
    %c0_i32_1 = arith.constant 0 : i32
    return %c0_i32, %c0_i32_0 : i32, i32
  }
  func.func @transform_5(%arg0: i32) -> (i32, i32) {
    %c0_i32 = arith.constant 0 : i32
    %c0_i32_0 = arith.constant 0 : i32
    %c0_i32_1 = arith.constant 0 : i32
    return %c0_i32, %c0_i32_0 : i32, i32
  }
  func.func @transform_6(%arg0: i32) -> (i32, i32, i32) {
    %c0_i32 = arith.constant 0 : i32
    %c0_i32_0 = arith.constant 0 : i32
    %c0_i32_1 = arith.constant 0 : i32
    return %arg0, %c0_i32, %c0_i32_0 : i32, i32, i32
  }
}

</mosaic_0001>

<bundles_post_ra>
// kernel: tpu_custom_call.1
= control target key start
LH: loop header
LB: loop body
LE: loop exit
PB: predicated region body
PF: predicated region fallthrough
CT: control target
= control target key end

     0   :  { %s1584_s0 = inlined_call_operand.hbm [shape: bf16[4,16,128], index: 0, kind: input, shape index: {}]   ;;  %s1585_s1 = inlined_call_operand.hbm [shape: bf16[4,16,16], index: 1, kind: input, shape index: {}]   ;;  %s1586_s2 = inlined_call_operand.hbm [shape: bf16[128,128], index: 2, kind: input, shape index: {}]   ;;  %s1587_s3 = inlined_call_operand.vmem [shape: f32[1,128], index: 3, kind: input, shape index: {}]   ;;  %s1588_s4 = inlined_call_operand.hbm [shape: bf16[128,128], index: 4, kind: input, shape index: {}]   ;;  %s1589_s5 = inlined_call_operand.vmem [shape: f32[1,128], index: 5, kind: input, shape index: {}]   ;;  %s1590_s6 = inlined_call_operand.hbm [shape: f32[4,16,128], index: 6, kind: output, shape index: {}]  }
   0x1   :  { %1598 = sst [smem:[#allocation16_spill]] %s1584_s0 }
   0x2   :  { %1599 = sst [smem:[#allocation17_spill]] %s1586_s2 }
   0x3   :  { %1600 = sst [smem:[#allocation18_spill]] %s1588_s4 }
   0x4   :  { %11 = vsyncpa [#allocation3], 0 }
   0x5   :  { %13 = vsyncpa [#allocation3 + $0x1], 0 }
   0x6   :  { %14 = vsyncpa [#allocation6], 0 }
   0x7   :  { %16 = vsyncpa [#allocation6 + $0x1], 0 }
   0x8   :  { %17 = vsyncpa [#allocation9], 0 }
   0x9   :  { %18 = vsyncpa [#allocation4], 0 }
   0xa   :  { %20 = vsyncpa [#allocation4 + $0x1], 0  ;;  %s1260_s21 = smov 0   ;;  %s1262_s22 = smov 0  }
   0xb   :  { %s1264_s23 = smov 0   ;;  %s1266_s24 = smov 0  }
   0xc LB: > { %s1281_s25 = sadd.s32 4294967295, %s1212_s24   ;;  %s801_s26 = sadd.s32 4294967294, %s1212_s24   ;;  %s1212_s24 = sphi %s1266_s24, %s1623_s24   ;;  %s1208_s23 = sphi %s1264_s23, %s1622_s23   ;;  %s1204_s22 = sphi %s1262_s22, %s1621_s22   ;;  %s1200_s21 = sphi %s1260_s21, %s1620_s21  }
   0xd   : > { %p46_p0 = scmp.ne.s32.totalorder %s1204_s22, %s1200_s21  ;;  %p1591_p1 = scmp.eq.s32.totalorder %s1281_s25, 0 }
   0xe   : > { %p186_p3 = scmp.eq.s32.totalorder %s801_s26, 3  ;;  %p802_p5 = scmp.ge.s32.totalorder %s1212_s24, 1 }
   0xf   : > { %p1290_p4 = por %p1591_p1, %p46_p0  ;;  %p193_p7 = scmp.lt.s32.totalorder %s1212_s24, 5 }
  0x10   : > { %p1295_p6 = por %p186_p3, %p46_p0  ;;  %s1214_s30 = smov [#allocation7]  }
  0x11   : > { %s1601_s27 = scalar_select %p1290_p4, 1, 0 }
  0x12   : > { %s1602_s28 = scalar_select %p1295_p6, 1, 0 }
  0x13   : > { %p1300_p8 = pnand %p802_p5, %p193_p7  ;;  %s205_s7 = sshll.u32 %s1214_s30, 4  ;;  %s206_s7 = int_to_ptr.vmem [resolvable:$true] %s205_s7 }
  0x14   : > { %s1215_s9 = smov [#allocation8]   ;;  %s1605_s2 = sld [smem:[#allocation17_spill]] }
  0x15   : > { %s1603_s29 = scalar_select %p1300_p8, 1, 0 }
  0x16   : > { %p936_p9 = pneg %p1300_p8  ;;  %s221_s10 = sshll.u32 %s1215_s9, 4  ;;  %s1312_s10 = int_to_ptr.vmem [resolvable:$true] %s221_s10 }
  0x18   : > { %p1308_p10 = pnand %p936_p9, %p1591_p1 }
  0x1a   : > { %s1018_s13 = scalar_lea.hbm %s1605_s2, 1024  ;;  %p1020_p12 = pneg %p1308_p10 }
  0x1b   : > { %p1019_p11 = scmp.ne.s32.totalorder %s1605_s2, %s1018_s13  ;;  %p1025_p3 = scmp.lt.u32.totalorder %s1018_s13, %s1605_s2 }
  0x1d   : > { %p1021_p13 = pnand %p1020_p12, %p1019_p11 }
  0x1f   : > { %p1022_p0 = pneg %p1021_p13 }
  0x21   : > { %p1027_p5 = pnand %p1025_p3, %p1022_p0 }
  0x23   : > { %1030 = shalt.err (!%p1027_p5)
}
  0x24   : > { %s1031_s18 = scalar_lea.vmem %s206_s7, 1024  ;;  %p1039_p2 = scmp.lt.s32.totalorder %s206_s7, %s206_s7 }
  0x25   : > { %p1032_p7 = scmp.ne.s32.totalorder %s206_s7, %s1031_s18  ;;  %p1040_p6 = scmp.lt.s32.totalorder %s1031_s18, %s1031_s18 }
  0x27   : > { %p1034_p9 = pnand %p1032_p7, %p1020_p12  ;;  %p1041_p4 = por %p1040_p6, %p1039_p2 }
  0x29   : > { %p1035_p1 = pneg %p1034_p9 }
  0x2b   : > { %p1042_p8 = pnand %p1041_p4, %p1035_p1 }
  0x2d   : > { %1045 = shalt.err (!%p1042_p8)
}
  0x2e   : > { %s1594_s19 = smov 64   ;;  %s1596_s20 = smov 4  }
  0x2f   : > { %939 = dma.hbm_to_vmem [thread:$0]  (!%p1308_p10), %s1605_s2, 1024, %s206_s7, [#allocation6], %s1594_s19, %s1594_s19, %s1596_s20  }
  0x30   : > { %s1606_s4 = sld [smem:[#allocation18_spill]] }
  0x36   : > { %s1046_s12 = scalar_lea.hbm %s1606_s4, 1024 }
  0x37   : > { %p1047_p1 = scmp.ne.s32.totalorder %s1606_s4, %s1046_s12  ;;  %p1053_p6 = scmp.lt.u32.totalorder %s1046_s12, %s1606_s4 }
  0x39   : > { %p1049_p2 = pnand %p1047_p1, %p1020_p12 }
  0x3b   : > { %p1050_p4 = pneg %p1049_p2 }
  0x3d   : > { %p1055_p8 = pnand %p1053_p6, %p1050_p4 }
  0x3f   : > { %1058 = shalt.err (!%p1055_p8)
}
  0x40   : > { %s1059_s7 = scalar_lea.vmem %s1312_s10, 1024  ;;  %p1067_p3 = scmp.lt.s32.totalorder %s1312_s10, %s1312_s10 }
  0x41   : > { %p1060_p11 = scmp.ne.s32.totalorder %s1312_s10, %s1059_s7  ;;  %p1068_p5 = scmp.lt.s32.totalorder %s1059_s7, %s1059_s7 }
  0x43   : > { %p1062_p13 = pnand %p1060_p11, %p1020_p12  ;;  %p1069_p7 = por %p1068_p5, %p1067_p3 }
  0x45   : > { %p1063_p0 = pneg %p1062_p13 }
  0x47   : > { %p1070_p9 = pnand %p1069_p7, %p1063_p0 }
  0x49   : > { %1073 = shalt.err (!%p1070_p9)
}
  0x4a   : > { %942 = dma.hbm_to_vmem [thread:$0]  (!%p1308_p10), %s1606_s4, 1024, %s1312_s10, [#allocation9], %s1594_s19, %s1594_s19, %s1596_s20  }
  0x4b   : > { %s1368_s8 = sadd.s32 1, %s1212_s24   ;;  %s33_s26 = sadd.s32 1, %s1208_s23 }
  0x4c   : > { %s30_s30 = ssub.s32 %s1212_s24, %s1368_s8  ;;  %p40_p12 = scmp.ne.s32.totalorder %s1208_s23, %s1204_s22 }
  0x4d   : > { %p31_p1 = scmp.eq.s32.totalorder %s30_s30, 0  ;;  %p41_p2 = scmp.eq.s32.totalorder %s1212_s24, 0 }
  0x4e   : > { %p1607_p4 = scmp.eq.s32.totalorder %s1281_s25, 3  ;;  %p956_p8 = scmp.lt.s32.totalorder %s1212_s24, 4 }
  0x4f   : > { %s1384_s11 = scalar_select %p31_p1, %s1208_s23, %s33_s26  }
  0x50   : > { %p1378_p6 = por %p1607_p4, %p40_p12  ;;  %p42_p11 = por %p41_p2, %p40_p12 }
  0x51   : > { %s238_s12 = sand.u32 1, %s1208_s23   ;;  %s845_s10 = sshll.u32 %s1212_s24, 7 }
  0x52   : > { %s806_s13 = sshll.u32 %s238_s12, 3  ;;  %s1609_s0 = sld [smem:[#allocation16_spill]] }
  0x53   : > { %s242_s7 = scalar_lea.vmem [#allocation2], %s806_s13  ;;  %p1395_p10 = pnand %p956_p8, %p42_p11 }
  0x54   : > { %s249_s17 = sshll.u32 %s242_s7, 4  ;;  %s1402_s14 = scalar_lea.hbm %s1585_s1, %s845_s10  ;;  %s1393_s17 = int_to_ptr.vmem [resolvable:$true] %s249_s17 }
  0x55   : > { %s263_s15 = scalar_lea.vmem [#allocation5], %s806_s13  ;;  %s1406_s20 = scalar_lea.sflag [#allocation3], %s238_s12 }
  0x56   : > { %s1404_s19 = sshll.u32 %s263_s15, 4  ;;  %p1076_p0 = pneg %p1395_p10  ;;  %s1438_s19 = int_to_ptr.vmem [resolvable:$true] %s1404_s19 }
  0x58   : > { %s1391_s16 = scalar_lea.hbm %s1609_s0, %s845_s10  ;;  %s1079_s26 = scalar_lea.hbm %s1609_s0, 512 }
  0x59   : > { %s1074_s7 = scalar_lea.hbm %s1391_s16, 128  ;;  %p1080_p7 = scmp.lt.u32.totalorder %s1391_s16, %s1609_s0 }
  0x5a   : > { %p1075_p13 = scmp.ne.s32.totalorder %s1391_s16, %s1074_s7  ;;  %p1081_p9 = scmp.lt.u32.totalorder %s1079_s26, %s1074_s7 }
  0x5b   : > { %p1083_p1 = scmp.lt.u32.totalorder %s1074_s7, %s1391_s16 }
  0x5c   : > { %p1077_p3 = pnand %p1076_p0, %p1075_p13  ;;  %p1082_p12 = por %p1081_p9, %p1080_p7 }
  0x5e   : > { %p1078_p5 = pneg %p1077_p3  ;;  %p1084_p2 = por %p1083_p1, %p1082_p12 }
  0x60   : > { %p1085_p4 = pnand %p1084_p2, %p1078_p5 }
  0x62   : > { %1088 = shalt.err (!%p1085_p4)
}
  0x63   : > { %s1089_s12 = scalar_lea.vmem %s1393_s17, 128  ;;  %s1218_s2 = smov [#allocation2]  }
  0x64   : > { %p1090_p8 = scmp.ne.s32.totalorder %s1393_s17, %s1089_s12  ;;  %s1094_s4 = sshll.u32 %s1218_s2, 4  ;;  %s1095_s4 = int_to_ptr.vmem [resolvable:$false] %s1094_s4 }
  0x65   : > { %s1096_s13 = scalar_lea.vmem %s1095_s4, 256  ;;  %p1097_p3 = scmp.lt.s32.totalorder %s1393_s17, %s1095_s4 }
  0x66   : > { %p1092_p11 = pnand %p1090_p8, %p1076_p0  ;;  %p1098_p7 = scmp.lt.s32.totalorder %s1096_s13, %s1089_s12 }
  0x68   : > { %p1093_p13 = pneg %p1092_p11  ;;  %p1099_p9 = por %p1098_p7, %p1097_p3 }
  0x6a   : > { %p1100_p12 = pnand %p1099_p9, %p1093_p13 }
  0x6c   : > { %1103 = shalt.err (!%p1100_p12)
}
  0x6d   : > { %s1611_s15 = smov 4   ;;  %s1612_s7 = smov 64  }
  0x6e   : > { %946 = dma.hbm_to_vmem [thread:$0]  (!%p1395_p10), %s1391_s16, 128, %s1393_s17, %s1406_s20, %s1612_s7, %s1612_s7, %s1611_s15  }
  0x6f   : > { %s259_s26 = sand.u32 1, %s1212_s24   ;;  %s1104_s10 = scalar_lea.hbm %s1402_s14, 128 }
  0x70   : > { %s1441_s30 = scalar_lea.sflag [#allocation6], %s259_s26  ;;  %p1105_p5 = scmp.ne.s32.totalorder %s1402_s14, %s1104_s10 }
  0x71   : > { %s1109_s4 = scalar_lea.hbm %s1585_s1, 512  ;;  %p1110_p4 = scmp.lt.u32.totalorder %s1402_s14, %s1585_s1 }
  0x72   : > { %p1107_p1 = pnand %p1105_p5, %p1076_p0  ;;  %p1111_p8 = scmp.lt.u32.totalorder %s1109_s4, %s1104_s10 }
  0x73   : > { %p1113_p13 = scmp.lt.u32.totalorder %s1104_s10, %s1402_s14 }
  0x74   : > { %p1108_p2 = pneg %p1107_p1  ;;  %p1112_p11 = por %p1111_p8, %p1110_p4 }
  0x76   : > { %p1114_p3 = por %p1113_p13, %p1112_p11 }
  0x78   : > { %p1115_p7 = pnand %p1114_p3, %p1108_p2 }
  0x7a   : > { %1118 = shalt.err (!%p1115_p7)
}
  0x7b   : > { %s1119_s20 = scalar_lea.vmem %s1438_s19, 128  ;;  %s1219_s16 = smov [#allocation5]  }
  0x7c   : > { %p1120_p9 = scmp.ne.s32.totalorder %s1438_s19, %s1119_s20  ;;  %s1124_s17 = sshll.u32 %s1219_s16, 4  ;;  %s1125_s17 = int_to_ptr.vmem [resolvable:$false] %s1124_s17 }
  0x7d   : > { %s1126_s0 = scalar_lea.vmem %s1125_s17, 256  ;;  %p1127_p1 = scmp.lt.s32.totalorder %s1438_s19, %s1125_s17 }
  0x7e   : > { %p1122_p12 = pnand %p1120_p9, %p1076_p0  ;;  %p1128_p4 = scmp.lt.s32.totalorder %s1126_s0, %s1119_s20 }
  0x80   : > { %p1123_p5 = pneg %p1122_p12  ;;  %p1129_p8 = por %p1128_p4, %p1127_p1 }
  0x82   : > { %p1130_p11 = pnand %p1129_p8, %p1123_p5 }
  0x84   : > { %1133 = shalt.err (!%p1130_p11)
}
  0x85   : > { %949 = dma.hbm_to_vmem [thread:$0]  (!%p1395_p10), %s1402_s14, 128, %s1438_s19, %s1441_s30, %s1612_s7, %s1612_s7, %s1611_s15  }
  0x86   : > { %p1613_p0 = scmp.ne.s32.totalorder %s1603_s29, 0 }
  0x87   : > { %s1473_s26 = sand.u32 (!%p1613_p0), 1, %s1204_s22   ;;  %p1614_p2 = scmp.ne.s32.totalorder (!%p1613_p0), %s1601_s27, 0 }
  0x88   : > { %282 = sbr.rel (%p1613_p0) target bundleno = 1076 (0x434), region = 44  ;;  %s813_s10 = sshll.u32 (!%p1613_p0), %s1473_s26, 3 }
  0x89   : > { %s285_s12 = scalar_lea.sflag (!%p1613_p0), [#allocation3], %s1473_s26  ;;  %s1477_s2 = scalar_lea.vmem (!%p1613_p0), [#allocation2], %s813_s10 }
  0x8f   : > { %1179 = dma.done.wait (%p1614_p2), %s285_s12, 128  }
  0x90   : > { %1181 = vsyncadd (%p1614_p2), %s285_s12, 4294967168  ;;  %s293_s19 = sand.u32 1, %s1281_s25   ;;  %s1484_s18 = scalar_lea.vmem [#allocation5], %s813_s10 }
  0x91   : > { %s294_s29 = scalar_lea.sflag [#allocation6], %s293_s19 }
  0x92   : > { %1183 = dma.done.wait (%p1614_p2), %s294_s29, 128  }
  0x93   : > { %1185 = vsyncadd (%p1614_p2), %s294_s29, 4294967168  ;;  %p1615_p10 = scmp.eq.s32.totalorder %s1281_s25, 0 }
  0x95   : > { %1187 = dma.done.wait (%p1615_p10), [#allocation6], 1024   ;;  %p1616_p13 = pmov %p1615_p10 }
  0x96   : > { %p1617_p3 = pmov %p1615_p10 }
  0x97   : > { %1189 = vsyncadd (%p1616_p13), [#allocation6], 4294966272 }
  0x98   : > { %1191 = dma.done.wait (%p1617_p3), [#allocation9], 1024   ;;  %p1618_p7 = pmov %p1617_p3 }
  0x99   : > { %v1220_v0 = vmov 0.0   ;;  %vm1221_vm0 = vmmov 0   ;;  %v1000_v1 = vld [vmem:[#allocation7] sm:$0xff]   ;;  %v1001_v2 = vld [vmem:[#allocation7 + $0x8] sm:$0xff]   ;;  %v1002_v3 = vld [vmem:[#allocation7 + $0x10] sm:$0xff]   ;;  %vm468_vm1 = vcmask 130048  }
  0x9a   : > { %1193 = vsyncadd (%p1618_p7), [#allocation9], 4294966272  ;;  %870 = vmatprep.subr.bf16.mxu0 %v1220_v0  ;;  %886 = vmatprep.mubr.msk.bf16.mxu0 %vm1221_vm0, %v1220_v0  ;;  %v1003_v4 = vld [vmem:[#allocation7 + $0x18] sm:$0xff]   ;;  %v1004_v5 = vld [vmem:[#allocation7 + $0x20] sm:$0xff]   ;;  %s817_s30 = sshll.u32 %s1473_s26, 4  ;;  %s847_s20 = sshll.u32 %s1281_s25, 8 }
  0x9b   : > { %890 = vmatprep.subr.bf16.mxu1 %v1220_v0  ;;  %892 = vmatprep.mubr.msk.bf16.mxu1 %vm1221_vm0, %v1220_v0  ;;  %v1005_v6 = vld [vmem:[#allocation7 + $0x28] sm:$0xff]   ;;  %v1006_v7 = vld [vmem:[#allocation7 + $0x30] sm:$0xff]   ;;  %v1007_v8 = vld [vmem:[#allocation7 + $0x38] sm:$0xff]   ;;  %s338_s4 = scalar_lea.vmem [#allocation10], %s817_s30  ;;  %s1541_s0 = scalar_lea.hbm %s1590_s6, %s847_s20 }
  0x9c   : > { %871 = vmatpush3.bf16.msra.mxu0 %v1000_v1  ;;  %v1008_v9 = vld [vmem:[%s1477_s2] sm:$0xff]   ;;  %v1009_v18 = vld [vmem:[%s1484_s18] sm:$0xff]   ;;  %s686_s13 = sshll.u32 %s338_s4, 4  ;;  %s673_s10 = scalar_lea.sflag [#allocation4], %s1473_s26  ;;  %s1536_s13 = int_to_ptr.vmem [resolvable:$true] %s686_s13 }
  0x9d   : > { %872 = vmatprep.subr.bf16.mxu0 %v1220_v0  ;;  %v818_v10 = vld [vmem:[%s1587_s3] ss:$0 sm:$0xff]  ;;  %v1011_v20 = vld [vmem:[#allocation8 + $0x8] sm:$0xff]   ;;  %v1012_v21 = vld [vmem:[#allocation8 + $0x10] sm:$0xff]   ;;  %s1134_s12 = scalar_lea.vmem %s1536_s13, 256  ;;  %s1222_s25 = smov [#allocation10]  }
  0x9e   : > { %v1010_v19 = vld [vmem:[#allocation8] sm:$0xff]   ;;  %v1013_v22 = vld [vmem:[#allocation8 + $0x18] sm:$0xff]   ;;  %v1015_v24 = vld [vmem:[#allocation8 + $0x28] sm:$0xff]   ;;  %p1135_p9 = scmp.ne.s32.totalorder %s1536_s13, %s1134_s12  ;;  %s1138_s2 = sshll.u32 %s1222_s25, 4  ;;  %s1139_s2 = int_to_ptr.vmem [resolvable:$false] %s1138_s2 }
  0x9f   : > { %v1014_v23 = vld [vmem:[#allocation8 + $0x20] sm:$0xff]   ;;  %v1016_v25 = vld [vmem:[#allocation8 + $0x30] sm:$0xff]   ;;  %v1017_v26 = vld [vmem:[#allocation8 + $0x38] sm:$0xff]   ;;  %s1140_s19 = scalar_lea.vmem %s1139_s2, 512  ;;  %p1141_p1 = scmp.lt.s32.totalorder %s1536_s13, %s1139_s2 }
  0xa0   : > { %873 = vmatpush3.bf16.msra.mxu0 %v1001_v2  ;;  %v830_v34 = vld [vmem:[%s1589_s5] ss:$0 sm:$0xff]  ;;  %p1136_p12 = pnand %p1135_p9, %p1378_p6  ;;  %p1142_p4 = scmp.lt.s32.totalorder %s1140_s19, %s1134_s12 }
  0xa1   : > { %874 = vmatprep.subr.bf16.mxu0 %v1220_v0 }
  0xa2   : > { %p1137_p5 = pneg %p1136_p12  ;;  %p1143_p8 = por %p1142_p4, %p1141_p1 }
  0xa4   : > { %875 = vmatpush3.bf16.msra.mxu0 %v1002_v3  ;;  %p1144_p11 = pnand %p1143_p8, %p1137_p5 }
  0xa5   : > { %876 = vmatprep.subr.bf16.mxu0 %v1220_v0 }
  0xa8   : > { %877 = vmatpush3.bf16.msra.mxu0 %v1003_v4 }
  0xa9   : > { %878 = vmatprep.subr.bf16.mxu0 %v1220_v0 }
  0xac   : > { %879 = vmatpush3.bf16.msra.mxu0 %v1004_v5 }
  0xad   : > { %880 = vmatprep.subr.bf16.mxu0 %v1220_v0 }
  0xb0   : > { %881 = vmatpush3.bf16.msra.mxu0 %v1005_v6 }
  0xb1   : > { %882 = vmatprep.subr.bf16.mxu0 %v1220_v0 }
  0xb4   : > { %883 = vmatpush3.bf16.msra.mxu0 %v1006_v7 }
  0xb5   : > { %884 = vmatprep.subr.bf16.mxu0 %v1220_v0 }
  0xb8   : > { %885 = vmatpush3.bf16.msra.mxu0 %v1007_v8 }
  0xb9   : > { %916 = vmatprep.subr.bf16.mxu0 %v1220_v0 }
  0xbb   : > { %887 = vmatmul.mubr.bf16.vlgmr.msra.gmra.mrb[0].mxu0 %v1008_v9 }
  0xbc   : > { %918 = vmatprep.mubr.msk.bf16.mxu0 %vm1221_vm0, %v1220_v0 }
 0x18e   : > { %v455_v11 = vpop.f32.mrb[0].mxu0 }
 0x18f   : > { %v888_v12 = vpop.f32.mrb[1].mxu0  ;;  %v456_v14 = vadd.f32 %v818_v10, %v455_v11 }
 0x190   : > { %v458_v13 = vpop.f32.mrb[2].mxu0 }
 0x191   : > { %v459_v15 = vadd.f32 %v818_v10, %v458_v13  ;;  %v889_v16 = vpop.f32.mrb[3].mxu0 }
 0x193   : > { %v462_v17 = vpack.c.bf16 %v459_v15, %v456_v14 }
 0x195   : > { %891 = vmatpush3.bf16.msra.mxu1 %v462_v17 }
 0x196   : > { %896 = vmatprep.subr.bf16.mxu1 %v1220_v0 }
 0x198   : > { %893 = vmatmul.mubr.msk.bf16.vlgmr.msra.gmra.mrb[0].mxu1 %vm468_vm1, %v1009_v18 }
 0x199   : > { %897 = vmatpush3.bf16.msra.mxu1 %v1010_v19  ;;  %912 = vmatprep.mubr.msk.bf16.mxu1 %vm1221_vm0, %v1220_v0 }
 0x19a   : > { %898 = vmatprep.subr.bf16.mxu1 %v1220_v0 }
 0x19d   : > { %899 = vmatpush3.bf16.msra.mxu1 %v1011_v20 }
 0x19e   : > { %900 = vmatprep.subr.bf16.mxu1 %v1220_v0 }
 0x1a1   : > { %901 = vmatpush3.bf16.msra.mxu1 %v1012_v21 }
 0x1a2   : > { %902 = vmatprep.subr.bf16.mxu1 %v1220_v0 }
 0x1a5   : > { %903 = vmatpush3.bf16.msra.mxu1 %v1013_v22 }
 0x1a6   : > { %904 = vmatprep.subr.bf16.mxu1 %v1220_v0 }
 0x1a9   : > { %905 = vmatpush3.bf16.msra.mxu1 %v1014_v23 }
 0x1aa   : > { %906 = vmatprep.subr.bf16.mxu1 %v1220_v0 }
 0x1ad   : > { %907 = vmatpush3.bf16.msra.mxu1 %v1015_v24 }
 0x1ae   : > { %908 = vmatprep.subr.bf16.mxu1 %v1220_v0 }
 0x1b1   : > { %909 = vmatpush3.bf16.msra.mxu1 %v1016_v25 }
 0x1b2   : > { %910 = vmatprep.subr.bf16.mxu1 %v1220_v0 }
 0x1b5   : > { %911 = vmatpush3.bf16.msra.mxu1 %v1017_v26 }
 0x26b   : > { %v506_v27 = vpop.f32.mrb[0].mxu1 }
 0x26c   : > { %v894_v28 = vpop.f32.mrb[1].mxu1  ;;  %v513_v30 = vmax.f32 %v506_v27, 0.0 }
 0x26d   : > { %v509_v29 = vpop.f32.mrb[2].mxu1 }
 0x26e   : > { %v514_v31 = vmax.f32 %v509_v29, 0.0  ;;  %v895_v32 = vpop.f32.mrb[3].mxu1 }
 0x270   : > { %v515_v33 = vpack.c.bf16 %v514_v31, %v513_v30 }
 0x272   : > { %913 = vmatmul.mubr.bf16.vlgmr.msra.gmra.mrb[4].mxu1 %v515_v33 }
 0x345   : > { %v621_v35 = vpop.f32.mrb[4].mxu1 }
 0x346   : > { %v914_v36 = vpop.f32.mrb[5].mxu1  ;;  %v622_v38 = vadd.f32 %v830_v34, %v621_v35 }
 0x347   : > { %v624_v37 = vpop.f32.mrb[6].mxu1 }
 0x348   : > { %v625_v39 = vadd.f32 %v830_v34, %v624_v37  ;;  %v915_v40 = vpop.f32.mrb[7].mxu1 }
 0x34a   : > { %v628_v41 = vpack.c.bf16 %v625_v39, %v622_v38 }
 0x34c   : > { %917 = vmatpush3.bf16.msra.mxu0 %v628_v41 }
 0x34f   : > { %919 = vmatmul.mubr.msk.bf16.vlgmr.msra.gmra.mrb[4].mxu0 %vm468_vm1, %v1009_v18 }
 0x422   : > { %v663_v42 = vpop.f32.mrb[4].mxu0 }
 0x423   : > { %670 = vst [vmem:[%s338_s4] sm:$0xff] %v663_v42  ;;  %v920_v43 = vpop.f32.mrb[5].mxu0 }
 0x424   : > { %v666_v44 = vpop.f32.mrb[6].mxu0 }
 0x425   : > { %671 = vst [vmem:[%s338_s4 + $0x8] sm:$0xff] %v666_v44  ;;  %v921_v45 = vpop.f32.mrb[7].mxu0 }
 0x426   : > { %1147 = shalt.err (!%p1144_p11)
}
 0x427   : > { %s1148_s29 = scalar_lea.hbm %s1541_s0, 256  ;;  %s1152_s14 = scalar_lea.hbm %s1590_s6, 1024 }
 0x428   : > { %p1149_p0 = scmp.ne.s32.totalorder %s1541_s0, %s1148_s29  ;;  %p1153_p13 = scmp.lt.u32.totalorder %s1541_s0, %s1590_s6 }
 0x429   : > { %p1154_p3 = scmp.lt.u32.totalorder %s1152_s14, %s1148_s29  ;;  %p1156_p9 = scmp.lt.u32.totalorder %s1148_s29, %s1541_s0 }
 0x42a   : > { %p1150_p2 = pnand %p1149_p0, %p1378_p6 }
 0x42b   : > { %p1155_p7 = por %p1154_p3, %p1153_p13 }
 0x42c   : > { %p1151_p10 = pneg %p1150_p2 }
 0x42d   : > { %p1157_p12 = por %p1156_p9, %p1155_p7 }
 0x42f   : > { %p1158_p5 = pnand %p1157_p12, %p1151_p10 }
 0x431   : > { %1161 = shalt.err (!%p1158_p5)
}
 0x432   : > { %s1223_s30 = smov 128   ;;  %s1224_s4 = smov 8  }
 0x433   : > { %934 = dma.vmem_to_hbm [thread:$0]  (%p1378_p6), %s1536_s13, 256, %s1541_s0, %s673_s10, %s1223_s30, %s1223_s30, %s1224_s4  }
 0x434 PF: > { %p959_p1 = scmp.ge.s32.totalorder %s1212_s24, 2  ;;  %s701_s20 = sand.u32 1, %s1200_s21  }
 0x435   : > { %p1619_p4 = scmp.ne.s32.totalorder %s1602_s28, 0  ;;  %s702_s16 = scalar_lea.sflag [#allocation4], %s701_s20 }
 0x437   : > { %p951_p8 = pnand %p959_p1, %p1619_p4 }
 0x439   : > { %1195 = dma.done.wait (!%p951_p8), %s702_s16, 256  }
 0x43a   : > { %1197 = vsyncadd (!%p951_p8), %s702_s16, 4294967040  ;;  %p23_p11 = scmp.ge.s32.totalorder %s1368_s8, 6   ;;  %s1620_s21 = smov %s1204_s22 }
 0x43b   : > { %s1621_s22 = smov %s1208_s23  ;;  %s1622_s23 = smov %s1384_s11 }
 0x43c   : > { %s1623_s24 = smov %s1368_s8  ;;  %25 = sbr.rel (!%p23_p11) target bundleno = 12 (0xc), region = 110 }
 0x443   :  { %707 = vsyncpa [#allocation3], 1 }
 0x444   :  { %709 = vsyncpa [#allocation3 + $0x1], 1 }
 0x445   :  { %710 = vsyncpa [#allocation6], 1 }
 0x446   :  { %712 = vsyncpa [#allocation6 + $0x1], 1 }
 0x447   :  { %713 = vsyncpa [#allocation9], 1 }
 0x448   :  { %714 = vsyncpa [#allocation4], 1 }
 0x449   :  { %716 = vsyncpa [#allocation4 + $0x1], 1 }

</bundles_post_ra>
